<compile_context>
chip_gen: v7x
topology: tpu7x:2x2x1
jax: 0.10.0
libtpu: 0.0.40
codegen_flags: <defaults>
</compile_context>

<pallas_src>
import math

import jax
import jax.numpy as jnp
from jax.experimental import pallas as pl
from jax.experimental.pallas import tpu as pltpu

_SMALL_BYTES = 1 << 20  # below this, a fused XLA elementwise op beats a kernel launch


def _denoise_kernel(x_ref, w_ref, o_ref):
    # y = w^2 / (w^2 + x); the (1, TM) weight row broadcasts over the (TN, TM)
    # x tile along the sublane (batch) axis. Math in f32 (safe for bf16 I/O).
    x = x_ref[...].astype(jnp.float32)
    w = w_ref[...].astype(jnp.float32)
    var = w * w
    o_ref[...] = (var / (var + x)).astype(o_ref.dtype)


def _choose_tiles(n, m, itemsize):
    """Pick (tn, tm) so tiles are lane-dense, ~4 MiB, and need no array padding."""
    # Sublane packing granularity per dtype width.
    g = {4: 8, 2: 16, 1: 32}.get(itemsize, 8)

    # Feature tile: multiples of 128 when aligned, otherwise the full feature
    # dim (a block dim equal to the full array dim is always legal).
    if m % 128 == 0:
        tm = min(2048, m)
    else:
        tm = m

    # Batch tile: target ~4 MiB per tile, rounded to the packing granularity.
    target_elems = (4 * 1024 * 1024) // itemsize
    tn = min(4096, max(g, target_elems // max(tm, 1)))
    tn = max(g, (tn // g) * g)
    if tn >= n:
        tn = n  # single (full-dim) block along batch — always legal
    return tn, tm


def denoise_layer(x, weight, *, force_pallas=False):
    """Applies y = weight^2 / (weight^2 + x).

    Args:
      x:      (*, M) array — variance of the measurements.
      weight: (M,)   array — standard deviation of the prior.
      force_pallas: skip the small-input jnp fallback (useful for testing).
    Returns:
      array with the same shape and dtype as `x`.
    """
    orig_shape = x.shape
    m = orig_shape[-1]
    assert weight.shape == (m,), "weight must be (M,)"

    itemsize = jnp.dtype(x.dtype).itemsize

    # Small-input fallback: the pallas_call launch dwarfs the work.
    if not force_pallas and x.size * itemsize < _SMALL_BYTES:
        var = weight.astype(jnp.float32) ** 2
        return (var / (var + x.astype(jnp.float32))).astype(x.dtype).reshape(orig_shape)

    # Flatten leading dims to a single batch axis. No padding, no output slice.
    x2 = x.reshape(-1, m)
    n = x2.shape[0]
    w2d = weight.reshape(1, m)

    tn, tm = _choose_tiles(n, m, itemsize)

    # Feature axis outer (slow), batch axis inner (fast): the weight block
    # index is constant across the inner loop, so its DMA is not re-fired.
    grid = (pl.cdiv(m, tm), pl.cdiv(n, tn))

    cost = pl.CostEstimate(
        flops=3 * n * m,
        transcendentals=0,
        bytes_accessed=2 * n * m * itemsize + m * jnp.dtype(weight.dtype).itemsize,
    )

    out = pl.pallas_call(
        _denoise_kernel,
        out_shape=jax.ShapeDtypeStruct((n, m), x.dtype),
        grid_spec=pl.GridSpec(
            grid=grid,
            in_specs=[
                pl.BlockSpec((tn, tm), lambda j, i: (i, j)),  # x tile
                pl.BlockSpec((1, tm), lambda j, i: (0, j)),   # weight row (resident over inner loop)
            ],
            out_specs=pl.BlockSpec((tn, tm), lambda j, i: (i, j)),
        ),
        compiler_params=pltpu.CompilerParams(
            # No reduction axis: both grid dims are independent.
            dimension_semantics=("parallel", "parallel"),
            # ~4 MiB tiles -> ~16 MiB live with double buffering; raise the
            # scoped limit above v5e's 16 MiB default, stay well under v7x's
            # 64 MiB/TC physical VMEM.
            vmem_limit_bytes=48 * 1024 * 1024,
        ),
        cost_estimate=cost,
    )(x2, w2d)

    return out.reshape(orig_shape)


def denoise_layer_ref(x, weight):
    var = weight.astype(jnp.float32) ** 2
    return (var / (var + x.astype(jnp.float32))).astype(x.dtype)


if __name__ == "__main__":
    key = jax.random.PRNGKey(0)
    k_x, k_w, k_x2, k_w2, k_x3, k_w3 = jax.random.split(key, 6)

    # 1) Small docstring-style shape (batch, M) with unaligned M=30, forced
    #    through the Pallas path (full-feature-dim block, no padding).
    N, M = 16, 30
    weight = jax.random.uniform(
        k_w, (M,), dtype=jnp.float32, minval=0.0, maxval=2.0 / math.sqrt(M)
    )
    x = jax.random.normal(k_x, (N, M), dtype=jnp.float32) ** 2  # variances > 0
    out = jax.block_until_ready(denoise_layer(x, weight, force_pallas=True))
    ref = denoise_layer_ref(x, weight)
    assert out.shape == (N, M)
    assert jnp.allclose(out, ref, atol=1e-6, rtol=1e-6), "mismatch vs reference (small)"

    # 2) Unaligned larger shape: ragged batch edge block, feature dim not a
    #    multiple of 128 -> full-feature-dim block, zero pad/slice traffic.
    N2, M2 = 520, 1500
    weight2 = jax.random.uniform(
        k_w2, (M2,), dtype=jnp.float32, minval=0.0, maxval=2.0 / math.sqrt(M2)
    )
    x2 = jax.random.normal(k_x2, (N2, M2), dtype=jnp.float32) ** 2
    out2 = jax.block_until_ready(denoise_layer(x2, weight2))
    ref2 = denoise_layer_ref(x2, weight2)
    assert out2.shape == (N2, M2)
    assert jnp.allclose(out2, ref2, atol=1e-6, rtol=1e-6), "mismatch (unaligned tiled)"

    # 3) 128-aligned shape with multiple feature blocks: exercises the
    #    feature-outer grid order and weight block re-use over the inner loop.
    N3, M3 = 256, 4096
    weight3 = jax.random.uniform(
        k_w3, (M3,), dtype=jnp.float32, minval=0.0, maxval=2.0 / math.sqrt(M3)
    )
    x3 = jax.random.normal(k_x3, (N3, M3), dtype=jnp.float32) ** 2
    out3 = jax.block_until_ready(denoise_layer(x3, weight3))
    ref3 = denoise_layer_ref(x3, weight3)
    assert out3.shape == (N3, M3)
    assert jnp.allclose(out3, ref3, atol=1e-6, rtol=1e-6), "mismatch (aligned tiled)"

    print("KERNEL_OK")
</pallas_src>

<mosaic_0001>
module attributes {stable_mosaic.version = 11 : i64} {
  func.func @_denoise_kernel(%arg0: i32, %arg1: i32, %arg2: memref<16x30xf32, #tpu.memory_space<vmem>>, %arg3: memref<1x30xf32, #tpu.memory_space<vmem>>, %arg4: memref<16x30xf32, #tpu.memory_space<vmem>>) attributes {dimension_semantics = [#tpu.dimension_semantics<parallel>, #tpu.dimension_semantics<parallel>], iteration_bounds = array<i64: 1, 1>, scalar_prefetch = 0 : i64, scratch_operands = 0 : i64, tpu.core_type = #tpu.core_type<tc>, window_params = [{transform_indices = @transform_0, window_bounds = array<i64: 16, 30>}, {transform_indices = @transform_1, window_bounds = array<i64: 1, 30>}, {transform_indices = @transform_2, window_bounds = array<i64: 16, 30>}]} {
    %c0 = arith.constant 0 : index
    %c0_0 = arith.constant 0 : index
    %0 = vector.load %arg2[%c0, %c0_0] : memref<16x30xf32, #tpu.memory_space<vmem>>, vector<16x30xf32>
    %c0_1 = arith.constant 0 : index
    %c0_2 = arith.constant 0 : index
    %1 = vector.load %arg3[%c0_1, %c0_2] : memref<1x30xf32, #tpu.memory_space<vmem>>, vector<1x30xf32>
    %2 = arith.mulf %1, %1 : vector<1x30xf32>
    %3 = vector.broadcast %2 : vector<1x30xf32> to vector<16x30xf32>
    %4 = arith.addf %3, %0 : vector<16x30xf32>
    %5 = vector.broadcast %2 : vector<1x30xf32> to vector<16x30xf32>
    %6 = arith.divf %5, %4 : vector<16x30xf32>
    %c0_3 = arith.constant 0 : index
    %c0_4 = arith.constant 0 : index
    %7 = vector.load %arg4[%c0_3, %c0_4] : memref<16x30xf32, #tpu.memory_space<vmem>>, vector<16x30xf32>
    tpu.vector_store %arg4[%c0_3, %c0_4], %6 {strides = array<i32>} : memref<16x30xf32, #tpu.memory_space<vmem>>, vector<16x30xf32>,
    return
  }
  func.func @transform_0(%arg0: i32, %arg1: i32) -> (i32, i32) {
    %c0_i32 = arith.constant 0 : i32
    return %arg1, %arg0 : i32, i32
  }
  func.func @transform_1(%arg0: i32, %arg1: i32) -> (i32, i32) {
    %c0_i32 = arith.constant 0 : i32
    %c0_i32_0 = arith.constant 0 : i32
    return %c0_i32, %arg0 : i32, i32
  }
  func.func @transform_2(%arg0: i32, %arg1: i32) -> (i32, i32) {
    %c0_i32 = arith.constant 0 : i32
    return %arg1, %arg0 : i32, i32
  }
}

</mosaic_0001>

<bundles_post_ra>
// kernel: tpu_custom_call.1
= control target key start
LH: loop header
LB: loop body
LE: loop exit
PB: predicated region body
PF: predicated region fallthrough
CT: control target
= control target key end

     0   :  { %7 = vsyncpa [#allocation3], 0  ;;  %s170_s0 = inlined_call_operand.hbm [shape: f32[16,30], index: 0, kind: input, shape index: {}]   ;;  %s171_s1 = inlined_call_operand.vmem [shape: f32[1,30], index: 1, kind: input, shape index: {}]   ;;  %s172_s2 = inlined_call_operand.hbm [shape: f32[16,30], index: 2, kind: output, shape index: {}]  }
   0x1   :  { %8 = vsyncpa [#allocation4], 0  ;;  %s118_s9 = smov [#allocation2]   ;;  %s70_s13 = scalar_lea.hbm %s170_s0, 256 }
   0x2   :  { %s14_s10 = sshll.u32 %s118_s9, 4  ;;  %p71_p0 = scmp.ne.s32.totalorder %s170_s0, %s70_s13  ;;  %s15_s10 = int_to_ptr.vmem [resolvable:$true] %s14_s10 }
   0x3   :  { %p74_p1 = scmp.lt.u32.totalorder %s70_s13, %s170_s0 }
   0x5   :  { %p76_p2 = pnand %p74_p1, %p71_p0 }
   0x7   :  { %79 = shalt.err (!%p76_p2)
}
   0x8   :  { %s80_s18 = scalar_lea.vmem %s15_s10, 256  ;;  %p85_p4 = scmp.lt.s32.totalorder %s15_s10, %s15_s10 }
   0x9   :  { %p81_p3 = scmp.ne.s32.totalorder %s15_s10, %s80_s18  ;;  %p86_p5 = scmp.lt.s32.totalorder %s80_s18, %s80_s18 }
   0xb   :  { %p87_p6 = por %p86_p5, %p85_p4 }
   0xd   :  { %p88_p7 = pnand %p87_p6, %p81_p3 }
   0xf   :  { %91 = shalt.err (!%p88_p7)
}
  0x10   :  { %s119_s19 = smov 128   ;;  %s120_s20 = smov 8  }
  0x11   :  { %20 = dma.hbm_to_vmem [thread:$0]  %s170_s0, 256, %s15_s10, [#allocation3], %s119_s19, %s119_s19, %s120_s20  }
  0x12   :  { %114 = dma.done.wait [#allocation3], 256  }
  0x13   :  { %115 = vsyncadd [#allocation3], 4294967040  ;;  %v31_v0 = vlaneseq  ;;  %v28_v3 = vld [vmem:[%s171_s1] sm:$0x1]  ;;  %v27_v6 = vld [vmem:[#allocation2 + $0x8] sm:$0xff]  ;;  %s121_s25 = smov [#allocation5]  }
  0x14   :  { %v29_v4 = vmul.f32 %v28_v3, %v28_v3  ;;  %v26_v5 = vld [vmem:[#allocation2] sm:$0xff]  ;;  %s50_s26 = sshll.u32 %s121_s25, 4  ;;  %vm42_vm0 = vcmask 244736   ;;  %s51_s26 = int_to_ptr.vmem [resolvable:$true] %s50_s26 }
  0x15   :  { %v32_v1 = vshrl.u32 %v31_v0, 7  ;;  %s92_s0 = scalar_lea.vmem %s51_s26, 256  ;;  %p97_p9 = scmp.lt.s32.totalorder %s51_s26, %s51_s26 }
  0x16   :  { %p93_p8 = scmp.ne.s32.totalorder %s51_s26, %s92_s0  ;;  %p98_p10 = scmp.lt.s32.totalorder %s92_s0, %s92_s0 }
  0x17   :  { %v33_v2 = vsub.s32 0, %v32_v1 }
  0x18   :  { %p99_p11 = por %p98_p10, %p97_p9 }
  0x19   :  { %v34_v7 = vrot.slane %v29_v4, %v33_v2 }
  0x1a   :  { %p100_p12 = pnand %p99_p11, %p93_p8 }
  0x1b   :  { %v36_v8 = vadd.f32 %v34_v7, %v26_v5  ;;  %v37_v9 = vadd.f32 %v34_v7, %v27_v6 }
  0x1d   :  { %66 = vrcp.f32 %v36_v8 }
  0x1e   :  { %68 = vrcp.f32 %v37_v9 }
  0x27   :  { %v67_v10 = vpop.eup %66 }
  0x28   :  { %v69_v11 = vpop.eup %68  ;;  %v39_v12 = vmul.f32 %v67_v10, %v34_v7 }
  0x29   :  { %v41_v13 = vmul.f32 %v69_v11, %v34_v7 }
  0x2a   :  { %43 = vst.msk [vmem:[#allocation5] sm:$0xff] %vm42_vm0, %v39_v12 }
  0x2b   :  { %44 = vst.msk [vmem:[#allocation5 + $0x8] sm:$0xff] %vm42_vm0, %v41_v13 }
  0x2c   :  { %103 = shalt.err (!%p100_p12)
}
  0x2d   :  { %s104_s28 = scalar_lea.hbm %s172_s2, 256 }
  0x2e   :  { %p105_p13 = scmp.ne.s32.totalorder %s172_s2, %s104_s28  ;;  %p108_p0 = scmp.lt.u32.totalorder %s104_s28, %s172_s2 }
  0x30   :  { %p110_p1 = pnand %p108_p0, %p105_p13 }
  0x32   :  { %113 = shalt.err (!%p110_p1)
}
  0x33   :  { %56 = dma.vmem_to_hbm [thread:$0]  %s51_s26, 256, %s172_s2, [#allocation4], %s119_s19, %s119_s19, %s120_s20  }
  0x34   :  { %116 = dma.done.wait [#allocation4], 256  }
  0x35   :  { %117 = vsyncadd [#allocation4], 4294967040 }
  0x36   :  { %60 = vsyncpa [#allocation3], 1 }
  0x37   :  { %61 = vsyncpa [#allocation4], 1 }

</bundles_post_ra>
